<compile_context>
chip_gen: v5e
topology: v5e:2x2
jax: 0.10.0
libtpu: 0.0.40
codegen_flags: <defaults>
</compile_context>

<pallas_src>
import jax
import jax.numpy as jnp
from jax.experimental import pallas as pl
from jax.experimental.pallas import tpu as pltpu

# ----------------------- problem sizes (small, synthetic) ------------------
T = 16                  # packet time steps
F = 32                  # packet features per step
D = T * F               # flattened input dim = 512
H = 128                 # hidden dim
C = 8                   # output classes
BODY_PARTS = ("wrist", "ankle")
NUM_BP = len(BODY_PARTS)


# ----------------------------- Pallas kernel -------------------------------
def _mlp_kernel(bp_ref, x_ref, w1_ref, b_ref, w2_ref, o_ref):
    # bp_ref: (1,) int32 scalar-prefetch (consumed by the index_maps only)
    # x_ref : (1, D)      f32   (cast to bf16 in-kernel; rides free on VPU)
    # w1_ref: (D, H)      bf16  (body-part slice picked by index_map)
    # b_ref : (1, H + C)  f32   layout: [ b1 | b2 ]
    # w2_ref: (H, C)      bf16
    # o_ref : (1, C)      f32
    del bp_ref
    x_bf = x_ref[...].astype(jnp.bfloat16)
    h = jnp.dot(x_bf, w1_ref[...], preferred_element_type=jnp.float32)
    h = jnp.maximum(h + b_ref[:, :H], 0.0)                 # f32 epilogue (ReLU)
    o = jnp.dot(h.astype(jnp.bfloat16), w2_ref[...],
                preferred_element_type=jnp.float32)
    o_ref[...] = o + b_ref[:, H:]


@jax.jit
def _dispatch_mlp(bp_idx, x_flat_f32, w1, b, w2):
    """Select + run the body-part MLP in one jitted, fused pallas_call.

    bp_idx     : (1,) int32         index of the fresh body part
    x_flat_f32 : (1, D) f32         flattened packet data
    w1         : (NUM_BP, D, H)     bf16
    b          : (NUM_BP, 1, H+C)   f32
    w2         : (NUM_BP, H, C)     bf16
    """
    bp_idx = jnp.clip(bp_idx, 0, NUM_BP - 1).astype(jnp.int32)
    return pl.pallas_call(
        _mlp_kernel,
        out_shape=jax.ShapeDtypeStruct((1, C), jnp.float32),
        grid_spec=pltpu.PrefetchScalarGridSpec(
            num_scalar_prefetch=1,
            grid=(1,),
            in_specs=[
                pl.BlockSpec((1, D), lambda i, bp: (0, 0)),
                pl.BlockSpec((None, D, H), lambda i, bp: (bp[0], 0, 0)),
                pl.BlockSpec((None, 1, H + C), lambda i, bp: (bp[0], 0, 0)),
                pl.BlockSpec((None, H, C), lambda i, bp: (bp[0], 0, 0)),
            ],
            out_specs=pl.BlockSpec((1, C), lambda i, bp: (0, 0)),
        ),
        compiler_params=pltpu.CompilerParams(
            dimension_semantics=("arbitrary",)),
    )(bp_idx, x_flat_f32, w1, b, w2)


# --------------------------- parameter stacking -----------------------------
def init_stacked_params(key):
    """Deterministic synthetic per-body-part MLP weights, stacked along bp."""
    k1, k2, k3, k4 = jax.random.split(key, 4)
    w1 = jax.random.normal(k1, (NUM_BP, D, H), jnp.float32) * (D ** -0.5)
    b1 = jax.random.normal(k2, (NUM_BP, 1, H), jnp.float32) * 0.01
    w2 = jax.random.normal(k3, (NUM_BP, H, C), jnp.float32) * (H ** -0.5)
    b2 = jax.random.normal(k4, (NUM_BP, 1, C), jnp.float32) * 0.01
    return {
        "w1": w1.astype(jnp.bfloat16),                 # (NUM_BP, D, H)
        "w2": w2.astype(jnp.bfloat16),                 # (NUM_BP, H, C)
        "b": jnp.concatenate([b1, b2], axis=-1),       # (NUM_BP, 1, H+C) f32
    }


# --------------------------- wrapper "module" -------------------------------
class SingleSensorModel:
    """JAX/Pallas port of the PyTorch dispatch wrapper.

    All body-part models share one jitted pallas_call; which weights are used
    is decided by a scalar-prefetch index, so there is no per-body-part
    retracing and only the selected body part's weights are DMA'd.
    """

    def __init__(self, stacked_params, body_parts=BODY_PARTS):
        self.params = stacked_params
        self.bp_index = {bp: i for i, bp in enumerate(body_parts)}

    def forward(self, x):
        for bp, packet in x.items():
            if packet["age"] == 0:
                # torch.tensor(data).float().unsqueeze(0) -> (1, T, F) f32
                packet_data = jnp.asarray(packet["data"], jnp.float32)[None, ...]
                x_flat = packet_data.reshape(1, -1)                 # (1, D) f32
                bp_idx = jnp.array([self.bp_index[bp]], jnp.int32)
                p = self.params
                return _dispatch_mlp(bp_idx, x_flat, p["w1"], p["b"], p["w2"])
        # TODO(synk): the data-dependent `age == 0` scan and the implicit
        # `return None` path stay in host Python (matching the reference
        # semantics); only the selected sub-model math runs on device.
        return None

    __call__ = forward


# --------------------------------- main --------------------------------------
if __name__ == "__main__":
    key = jax.random.PRNGKey(0)
    k_params, k_d0, k_d1 = jax.random.split(key, 3)

    params = init_stacked_params(k_params)
    model = SingleSensorModel(params)

    # Only "ankle" has a fresh packet (age == 0), so only the ankle model's
    # weights are selected — matching the PyTorch dispatch semantics.
    x = {
        "wrist": {"age": 3, "data": jax.random.normal(k_d0, (T, F), jnp.float32)},
        "ankle": {"age": 0, "data": jax.random.normal(k_d1, (T, F), jnp.float32)},
    }

    out = model(x)
    out = jax.block_until_ready(out)
    assert out.shape == (1, C) and out.dtype == jnp.float32

    # Pure-JAX reference of the same bf16-weight / f32-accumulate MLP.
    i = model.bp_index["ankle"]
    xb = jnp.asarray(x["ankle"]["data"], jnp.float32).reshape(1, -1).astype(jnp.bfloat16)
    w1_i, w2_i, b_i = params["w1"][i], params["w2"][i], params["b"][i]
    h_ref = jnp.maximum(
        jnp.dot(xb, w1_i, preferred_element_type=jnp.float32) + b_i[:, :H], 0.0)
    ref = jnp.dot(h_ref.astype(jnp.bfloat16), w2_i,
                  preferred_element_type=jnp.float32) + b_i[:, H:]
    assert jnp.allclose(out, ref, atol=2e-2, rtol=2e-2), (out, ref)

    # No fresh packet -> None, like the PyTorch reference.
    stale = {
        "wrist": {"age": 2, "data": x["wrist"]["data"]},
        "ankle": {"age": 1, "data": x["ankle"]["data"]},
    }
    assert model(stale) is None

    print("KERNEL_OK")
</pallas_src>

<mosaic_0001>
module attributes {stable_mosaic.version = 11 : i64} {
  func.func @_mlp_kernel(%arg0: i32, %arg1: memref<1xi32, #tpu.memory_space<smem>>, %arg2: memref<1x512xf32, #tpu.memory_space<vmem>>, %arg3: memref<1x512x128xbf16, #tpu.memory_space<vmem>>, %arg4: memref<1x1x136xf32, #tpu.memory_space<vmem>>, %arg5: memref<1x128x8xbf16, #tpu.memory_space<vmem>>, %arg6: memref<1x8xf32, #tpu.memory_space<vmem>>) attributes {dimension_semantics = [#tpu.dimension_semantics<arbitrary>], iteration_bounds = array<i64: 1>, scalar_prefetch = 1 : i64, scratch_operands = 0 : i64, tpu.core_type = #tpu.core_type<tc>, window_params = [{pipeline_mode = #tpu.pipeline_mode<synchronous>, transform_indices = @transform_0, window_bounds = array<i64: 1, 512>}, {transform_indices = @transform_1, window_bounds = array<i64: 1, 512, 128>}, {transform_indices = @transform_2, window_bounds = array<i64: 1, 1, 136>}, {transform_indices = @transform_3, window_bounds = array<i64: 1, 128, 8>}, {pipeline_mode = #tpu.pipeline_mode<synchronous>, transform_indices = @transform_4, window_bounds = array<i64: 1, 8>}]} {
    %c0 = arith.constant 0 : index
    %c0_0 = arith.constant 0 : index
    %0 = vector.load %arg2[%c0, %c0_0] : memref<1x512xf32, #tpu.memory_space<vmem>>, vector<1x512xf32>
    %1 = arith.truncf %0 : vector<1x512xf32> to vector<1x512xbf16>
    %c0_1 = arith.constant 0 : index
    %c0_2 = arith.constant 0 : index
    %c0_3 = arith.constant 0 : index
    %2 = vector.load %arg3[%c0_1, %c0_2, %c0_3] : memref<1x512x128xbf16, #tpu.memory_space<vmem>>, vector<1x512x128xbf16>
    %3 = vector.shape_cast %2 : vector<1x512x128xbf16> to vector<512x128xbf16>
    %cst = arith.constant dense<0.000000e+00> : vector<1x128xf32>
    %4 = tpu.matmul %1, %3, %cst {dimension_numbers = #tpu.dot_dimension_numbers<[1], [0], [0], [1], [0, 0, 1, 1], [], []>} : vector<1x512xbf16>, vector<512x128xbf16>, vector<1x128xf32> -> vector<1x128xf32>
    %c0_4 = arith.constant 0 : index
    %c0_5 = arith.constant 0 : index
    %c0_6 = arith.constant 0 : index
    %5 = vector.load %arg4[%c0_4, %c0_5, %c0_6] : memref<1x1x136xf32, #tpu.memory_space<vmem>>, vector<1x1x128xf32>
    %6 = vector.shape_cast %5 : vector<1x1x128xf32> to vector<1x128xf32>
    %7 = arith.addf %4, %6 : vector<1x128xf32>
    %cst_7 = arith.constant 0.000000e+00 : f32
    %8 = vector.broadcast %cst_7 : f32 to vector<1x128xf32>
    %9 = arith.maximumf %7, %8 : vector<1x128xf32>
    %10 = arith.truncf %9 : vector<1x128xf32> to vector<1x128xbf16>
    %c0_8 = arith.constant 0 : index
    %c0_9 = arith.constant 0 : index
    %c0_10 = arith.constant 0 : index
    %11 = vector.load %arg5[%c0_8, %c0_9, %c0_10] : memref<1x128x8xbf16, #tpu.memory_space<vmem>>, vector<1x128x8xbf16>
    %12 = vector.shape_cast %11 : vector<1x128x8xbf16> to vector<128x8xbf16>
    %cst_11 = arith.constant dense<0.000000e+00> : vector<1x8xf32>
    %13 = tpu.matmul %10, %12, %cst_11 {dimension_numbers = #tpu.dot_dimension_numbers<[1], [0], [0], [1], [0, 0, 1, 1], [], []>} : vector<1x128xbf16>, vector<128x8xbf16>, vector<1x8xf32> -> vector<1x8xf32>
    %c0_12 = arith.constant 0 : index
    %c0_13 = arith.constant 0 : index
    %c128 = arith.constant 128 : index
    %14 = vector.load %arg4[%c0_12, %c0_13, %c128] : memref<1x1x136xf32, #tpu.memory_space<vmem>>, vector<1x1x8xf32>
    %15 = vector.shape_cast %14 : vector<1x1x8xf32> to vector<1x8xf32>
    %16 = arith.addf %13, %15 : vector<1x8xf32>
    %c0_14 = arith.constant 0 : index
    %c0_15 = arith.constant 0 : index
    %17 = vector.load %arg6[%c0_14, %c0_15] : memref<1x8xf32, #tpu.memory_space<vmem>>, vector<1x8xf32>
    tpu.vector_store %arg6[%c0_14, %c0_15], %16 {strides = array<i32>} : memref<1x8xf32, #tpu.memory_space<vmem>>, vector<1x8xf32>,
    return
  }
  func.func @transform_0(%arg0: i32, %arg1: memref<1xi32, #tpu.memory_space<smem>>) -> (i32, i32) {
    %c0_i32 = arith.constant 0 : i32
    %c0_i32_0 = arith.constant 0 : i32
    %c0_i32_1 = arith.constant 0 : i32
    return %c0_i32, %c0_i32_0 : i32, i32
  }
  func.func @transform_1(%arg0: i32, %arg1: memref<1xi32, #tpu.memory_space<smem>>) -> (i32, i32, i32) {
    %c0 = arith.constant 0 : index
    %0 = memref.load %arg1[%c0] : memref<1xi32, #tpu.memory_space<smem>>
    %c0_i32 = arith.constant 0 : i32
    %c0_i32_0 = arith.constant 0 : i32
    %c0_i32_1 = arith.constant 0 : i32
    return %0, %c0_i32, %c0_i32_0 : i32, i32, i32
  }
  func.func @transform_2(%arg0: i32, %arg1: memref<1xi32, #tpu.memory_space<smem>>) -> (i32, i32, i32) {
    %c0 = arith.constant 0 : index
    %0 = memref.load %arg1[%c0] : memref<1xi32, #tpu.memory_space<smem>>
    %c0_i32 = arith.constant 0 : i32
    %c0_i32_0 = arith.constant 0 : i32
    %c0_i32_1 = arith.constant 0 : i32
    return %0, %c0_i32, %c0_i32_0 : i32, i32, i32
  }
  func.func @transform_3(%arg0: i32, %arg1: memref<1xi32, #tpu.memory_space<smem>>) -> (i32, i32, i32) {
    %c0 = arith.constant 0 : index
    %0 = memref.load %arg1[%c0] : memref<1xi32, #tpu.memory_space<smem>>
    %c0_i32 = arith.constant 0 : i32
    %c0_i32_0 = arith.constant 0 : i32
    %c0_i32_1 = arith.constant 0 : i32
    return %0, %c0_i32, %c0_i32_0 : i32, i32, i32
  }
  func.func @transform_4(%arg0: i32, %arg1: memref<1xi32, #tpu.memory_space<smem>>) -> (i32, i32) {
    %c0_i32 = arith.constant 0 : i32
    %c0_i32_0 = arith.constant 0 : i32
    %c0_i32_1 = arith.constant 0 : i32
    return %c0_i32, %c0_i32_0 : i32, i32
  }
}

</mosaic_0001>

<bundles_post_ra>
// kernel: _dispatch_mlp.1
= control target key start
LH: loop header
LB: loop body
LE: loop exit
PB: predicated region body
PF: predicated region fallthrough
CT: control target
= control target key end

     0   :  { %11 = vsyncpa [#allocation5], 0  ;;  %s855_s0 = inlined_call_operand.<no memory space> [shape: s32[1], index: 0, kind: input, shape index: {}]   ;;  %s856_s1 = inlined_call_operand.vmem [shape: f32[1,512], index: 1, kind: input, shape index: {}]   ;;  %s857_s2 = inlined_call_operand.hbm [shape: bf16[2,512,128], index: 2, kind: input, shape index: {}]   ;;  %s858_s3 = inlined_call_operand.vmem [shape: f32[2,1,136], index: 3, kind: input, shape index: {}]   ;;  %s859_s4 = inlined_call_operand.vmem [shape: bf16[2,128,8], index: 4, kind: input, shape index: {}]   ;;  %s860_s5 = inlined_call_operand.hbm [shape: f32[1,8], index: 5, kind: output, shape index: {}]  }
   0x1   :  { %12 = vsyncpa [#allocation6], 0  ;;  %s679_s20 = sshll.u32 %s855_s0, 8  ;;  %s777_s24 = smov [#allocation4]  }
   0x2   :  { %s22_s23 = scalar_lea.hbm %s857_s2, %s679_s20  ;;  %s25_s25 = sshll.u32 %s777_s24, 4  ;;  %s26_s25 = int_to_ptr.vmem [resolvable:$true] %s25_s25 }
   0x3   :  { %s23_s26 = sshll.u32 %s22_s23, 4  ;;  %s729_s6 = scalar_lea.hbm %s857_s2, 512  ;;  %s24_s26 = int_to_ptr.hbm [resolvable:$true] %s23_s26 }
   0x4   :  { %s725_s27 = sshra.s32 %s24_s26, 4  ;;  %s726_s27 = int_to_ptr.hbm [resolvable:$true] %s725_s27 }
   0x5   :  { %s727_s28 = scalar_lea.hbm %s726_s27, 256  ;;  %p730_p1 = scmp.lt.s32.totalorder %s726_s27, %s857_s2 }
   0x6   :  { %p728_p0 = scmp.ne.s32.totalorder %s726_s27, %s727_s28  ;;  %p731_p2 = scmp.lt.s32.totalorder %s729_s6, %s727_s28 }
   0x8   :  { %p732_p3 = por %p731_p2, %p730_p1 }
   0xa   :  { %p733_p4 = pnand %p732_p3, %p728_p0 }
   0xc   :  { %736 = shalt.err (!%p733_p4)
}
   0xd   :  { %s778_s9 = smov 64   ;;  %s779_s10 = smov 4  }
   0xe   :  { %31 = dma.hbm_to_vmem [thread:$0]  %s24_s26, 4096, %s26_s25, [#allocation5], %s778_s9, %s778_s9, %s779_s10  }
   0xf   :  { %773 = dma.done.wait [#allocation5], 4096  }
  0x10   :  { %774 = vsyncadd [#allocation5], 4294963200  ;;  %v688_v0 = vld [vmem:[#allocation4 + $0x38] sm:$0xff]  ;;  %v687_v4 = vld [vmem:[#allocation4 + $0x30] sm:$0xff]  ;;  %p66_p5 = scmp.lt.s32.totalorder %s855_s0, 1  ;;  %s490_s24 = sshll.u32 %s860_s5, 4  ;;  %s491_s24 = int_to_ptr.hbm [resolvable:$true] %s490_s24 }
  0x11   :  { %v696_v1 = vld [vmem:[#allocation4 + $0x78] sm:$0xff]  ;;  %349 = vmatpush.bf16.msra.mxu0 %v688_v0  ;;  %v695_v5 = vld [vmem:[#allocation4 + $0x70] sm:$0xff]  ;;  %v686_v8 = vld [vmem:[#allocation4 + $0x28] sm:$0xff]  ;;  %vm481_vm0 = vcmask 57344  }
  0x12   :  { %v704_v2 = vld [vmem:[#allocation4 + $0xb8] sm:$0xff]  ;;  %362 = vmatpush.bf16.msra.mxu1 %v696_v1  ;;  %v703_v6 = vld [vmem:[#allocation4 + $0xb0] sm:$0xff]  ;;  %v694_v9 = vld [vmem:[#allocation4 + $0x68] sm:$0xff]  ;;  %s862_s0 = smov (!%p66_p5, %s855_s0), 1 }
  0x13   :  { %v712_v3 = vld [vmem:[#allocation4 + $0xf8] sm:$0xff]  ;;  %375 = vmatpush.bf16.msra.mxu2 %v704_v2  ;;  %v711_v7 = vld [vmem:[#allocation4 + $0xf0] sm:$0xff]  ;;  %v702_v10 = vld [vmem:[#allocation4 + $0xa8] sm:$0xff]  ;;  %s680_s16 = sshll.u32 %s862_s0, 6 }
  0x14   :  { %388 = vmatpush.bf16.msra.mxu3 %v712_v3  ;;  %v710_v11 = vld [vmem:[#allocation4 + $0xe8] sm:$0xff]  ;;  %v685_v12 = vld [vmem:[#allocation4 + $0x20] sm:$0xff]  ;;  %v684_v16 = vld [vmem:[#allocation4 + $0x18] sm:$0xff]  ;;  %s838_s19 = scalar_lea.vmem %s859_s4, %s680_s16 }
  0x15   :  { %350 = vmatpush.bf16.msra.mxu0 %v687_v4  ;;  %v693_v13 = vld [vmem:[#allocation4 + $0x60] sm:$0xff]  ;;  %v692_v17 = vld [vmem:[#allocation4 + $0x58] sm:$0xff]  ;;  %v683_v20 = vld [vmem:[#allocation4 + $0x10] sm:$0xff] }
  0x16   :  { %363 = vmatpush.bf16.msra.mxu1 %v695_v5  ;;  %v701_v14 = vld [vmem:[#allocation4 + $0xa0] sm:$0xff]  ;;  %v700_v18 = vld [vmem:[#allocation4 + $0x98] sm:$0xff]  ;;  %v691_v21 = vld [vmem:[#allocation4 + $0x50] sm:$0xff] }
  0x17   :  { %376 = vmatpush.bf16.msra.mxu2 %v703_v6  ;;  %v709_v15 = vld [vmem:[#allocation4 + $0xe0] sm:$0xff]  ;;  %v708_v19 = vld [vmem:[#allocation4 + $0xd8] sm:$0xff]  ;;  %v699_v22 = vld [vmem:[#allocation4 + $0x90] sm:$0xff] }
  0x18   :  { %389 = vmatpush.bf16.msra.mxu3 %v711_v7  ;;  %v707_v23 = vld [vmem:[#allocation4 + $0xd0] sm:$0xff]  ;;  %v682_v24 = vld [vmem:[#allocation4 + $0x8] sm:$0xff]  ;;  %v78_v26 = vld [vmem:[%s856_s1] sm:$0xf]  ;;  %s516_s1 = sshll.u32 %s862_s0, 1  ;;  %s780_s0 = smov [#allocation7]  }
  0x19   :  { %351 = vmatpush.bf16.msra.mxu0 %v686_v8  ;;  %v690_v25 = vld [vmem:[#allocation4 + $0x48] sm:$0xff]  ;;  %v80_v29 = vperm.slane %v78_v26, 0  ;;  %v81_v30 = vperm.slane %v78_v26, 1  ;;  %v681_v31 = vld [vmem:[#allocation4] sm:$0xff]  ;;  %v82_v33 = vperm.slane %v78_v26, 2  ;;  %v83_v34 = vperm.slane %v78_v26, 3  ;;  %s69_s21 = scalar_lea.vmem %s858_s3, %s516_s1 }
  0x1a   :  { %364 = vmatpush.bf16.msra.mxu1 %v694_v9  ;;  %v698_v27 = vld [vmem:[#allocation4 + $0x88] sm:$0xff]  ;;  %v689_v32 = vld [vmem:[#allocation4 + $0x40] sm:$0xff]  ;;  %v720_v37 = vld [vmem:[%s838_s19 + $0x38] sm:$0xff]  ;;  %s488_s22 = sshll.u32 %s780_s0, 4  ;;  %s489_s22 = int_to_ptr.vmem [resolvable:$true] %s488_s22 }
  0x1b   :  { %377 = vmatpush.bf16.msra.mxu2 %v702_v10  ;;  %v706_v28 = vld [vmem:[#allocation4 + $0xc8] sm:$0xff]  ;;  %v697_v35 = vld [vmem:[#allocation4 + $0x80] sm:$0xff]  ;;  %v88_v38 = vpack.c.bf16 %v80_v29, %v80_v29  ;;  %v89_v39 = vpack.c.bf16 %v81_v30, %v81_v30  ;;  %v90_v40 = vpack.c.bf16 %v82_v33, %v82_v33  ;;  %v91_v41 = vpack.c.bf16 %v83_v34, %v83_v34  ;;  %v719_v42 = vld [vmem:[%s838_s19 + $0x30] sm:$0xff] }
  0x1c   :  { %390 = vmatpush.bf16.msra.mxu3 %v710_v11  ;;  %v705_v36 = vld [vmem:[#allocation4 + $0xc0] sm:$0xff]  ;;  %v718_v43 = vld [vmem:[%s838_s19 + $0x28] sm:$0xff]  ;;  %v716_v45 = vld [vmem:[%s838_s19 + $0x18] sm:$0xff] }
  0x1d   :  { %352 = vmatpush.bf16.msra.mxu0 %v685_v12  ;;  %v717_v44 = vld [vmem:[%s838_s19 + $0x20] sm:$0xff]  ;;  %v715_v46 = vld [vmem:[%s838_s19 + $0x10] sm:$0xff]  ;;  %v714_v47 = vld [vmem:[%s838_s19 + $0x8] sm:$0xff] }
  0x1e   :  { %365 = vmatpush.bf16.msra.mxu1 %v693_v13  ;;  %v713_v48 = vld [vmem:[%s838_s19] sm:$0xff] }
  0x1f   :  { %378 = vmatpush.bf16.msra.mxu2 %v701_v14  ;;  %v156_v49 = vld [vmem:[%s69_s21] sm:$0x1]  ;;  %v419_v0 = vld [vmem:[%s69_s21 + $0x1] sm:$0x1] }
  0x20   :  { %391 = vmatpush.bf16.msra.mxu3 %v709_v15 }
  0x21   :  { %353 = vmatpush.bf16.msra.mxu0 %v684_v16 }
  0x22   :  { %366 = vmatpush.bf16.msra.mxu1 %v692_v17 }
  0x23   :  { %379 = vmatpush.bf16.msra.mxu2 %v700_v18 }
  0x24   :  { %392 = vmatpush.bf16.msra.mxu3 %v708_v19 }
  0x25   :  { %354 = vmatpush.bf16.msra.mxu0 %v683_v20 }
  0x26   :  { %367 = vmatpush.bf16.msra.mxu1 %v691_v21 }
  0x27   :  { %380 = vmatpush.bf16.msra.mxu2 %v699_v22 }
  0x28   :  { %393 = vmatpush.bf16.msra.mxu3 %v707_v23 }
  0x29   :  { %355 = vmatpush.bf16.msra.mxu0 %v682_v24 }
  0x2a   :  { %368 = vmatpush.bf16.msra.mxu1 %v690_v25 }
  0x2b   :  { %381 = vmatpush.bf16.msra.mxu2 %v698_v27 }
  0x2c   :  { %394 = vmatpush.bf16.msra.mxu3 %v706_v28 }
  0x2d   :  { %356 = vmatpush.bf16.msra.mxu0 %v681_v31 }
  0x2e   :  { %369 = vmatpush.bf16.msra.mxu1 %v689_v32 }
  0x2f   :  { %382 = vmatpush.bf16.msra.mxu2 %v697_v35 }
  0x30   :  { %395 = vmatpush.bf16.msra.mxu3 %v705_v36  ;;  %357 = vmatmul.bf16.vlgmr.msra.gmra.mxu0 %v88_v38 }
  0x31   :  { %468 = vmatpush.bf16.msrb.mxu0 %v720_v37  ;;  %370 = vmatmul.bf16.vlgmr.msra.gmra.mxu1 %v89_v39 }
  0x32   :  { %383 = vmatmul.bf16.vlgmr.msra.gmra.mxu2 %v90_v40 }
  0x33   :  { %396 = vmatmul.bf16.vlgmr.msra.gmra.mxu3 %v91_v41 }
  0x35   :  { %469 = vmatpush.bf16.msrb.mxu0 %v719_v42 }
  0x39   :  { %470 = vmatpush.bf16.msrb.mxu0 %v718_v43 }
  0x3d   :  { %471 = vmatpush.bf16.msrb.mxu0 %v717_v44 }
  0x41   :  { %472 = vmatpush.bf16.msrb.mxu0 %v716_v45 }
  0x45   :  { %473 = vmatpush.bf16.msrb.mxu0 %v715_v46 }
  0x49   :  { %474 = vmatpush.bf16.msrb.mxu0 %v714_v47 }
  0x4d   :  { %475 = vmatpush.bf16.msrb.mxu0 %v713_v48 }
  0xad   :  { %v358_v50 = vpop.f32.mrf.mxu0 }
  0xae   :  { %v371_v51 = vpop.f32.mrf.mxu1  ;;  %v359_v52 = vadd.f32 %v358_v50, %v156_v49 }
  0xb0   :  { %v372_v53 = vadd.f32 %v371_v51, %v359_v52 }
  0xb5   :  { %v384_v54 = vpop.f32.mrf.mxu2  ;;  %v360_v57 = vpop.f32.mrf.mxu0 }
  0xb6   :  { %v397_v55 = vpop.f32.mrf.mxu3  ;;  %v385_v56 = vadd.f32 %v384_v54, %v372_v53  ;;  %v373_v58 = vpop.f32.mrf.mxu1 }
  0xb8   :  { %v398_v59 = vadd.f32 %v397_v55, %v385_v56 }
  0xba   :  { %v401_v60 = vmax.f32 %v398_v59, 0.0 }
  0xbc   :  { %v402_v61 = vpack.c.bf16 %v401_v60, %v401_v60 }
  0xbd   :  { %v386_v62 = vpop.f32.mrf.mxu2 }
  0xbe   :  { %v399_v63 = vpop.f32.mrf.mxu3  ;;  %476 = vmatmul.bf16.vlgmr.msrb.gmra.mxu0 %v402_v61 }
 0x13b   :  { %v477_v1 = vpop.f32.mrf.mxu0 }
 0x13c   :  { %v478_v2 = vadd.f32 %v477_v1, %v419_v0 }
 0x13e   :  { %482 = vst.msk [vmem:[#allocation7] sm:$0x1] %vm481_vm0, %v478_v2 }
 0x13f   :  { %493 = dma.vmem_to_hbm [thread:$0]  %s489_s22, 16, %s491_s24, [#allocation6]  }
 0x143   :  { %v479_v3 = vpop.f32.mrf.mxu0 }
 0x144   :  { %775 = dma.done.wait [#allocation6], 16  }
 0x145   :  { %776 = vsyncadd [#allocation6], 4294967280 }
 0x146   :  { %498 = vsyncpa [#allocation5], 1 }
 0x147   :  { %499 = vsyncpa [#allocation6], 1 }

</bundles_post_ra>
